<compile_context>
chip_gen: v7x
topology: tpu7x:2x2x1
jax: 0.10.0
libtpu: 0.0.40
codegen_flags: <defaults>
</compile_context>

<pallas_src>
import jax
import jax.numpy as jnp
from jax.experimental import pallas as pl
from jax.experimental.pallas import tpu as pltpu

LANE = 128      # per-gate padded width (lane-aligned)
KPAD = 2 * LANE  # packed [x | h] feature width
GPAD = 4 * LANE  # packed gate width


def _eps_greedy_lstm_kernel(x_ref, h0_ref, c0_ref, w_ref, b_ref,
                            h_ref, c_ref):
    """One timestep per grid iteration; h_ref/c_ref are the resident state."""
    t = pl.program_id(0)

    @pl.when(t == 0)
    def _():
        h_ref[...] = h0_ref[...]
        c_ref[...] = c0_ref[...]

    h = h_ref[...]
    c = c_ref[...]

    # Fused activation [x_t | h]: both halves are 128-lane aligned, so the
    # concat is pure vreg placement (no cross-lane movement).
    act = jnp.concatenate([x_ref[0], h], axis=1)            # (Bp, 256)

    # Single MXU matmul for all four gates.
    gates = jnp.dot(act, w_ref[...],
                    preferred_element_type=jnp.float32) + b_ref[...]  # (Bp, 512)

    # Gate slices start at lane offsets 0/128/256/384 -> free selects.
    i_g = jax.nn.sigmoid(gates[:, 0 * LANE:1 * LANE])
    f_g = jax.nn.sigmoid(gates[:, 1 * LANE:2 * LANE])
    g_g = jnp.tanh(gates[:, 2 * LANE:3 * LANE])
    o_g = jax.nn.sigmoid(gates[:, 3 * LANE:4 * LANE])

    c_new = f_g * c + i_g * g_g
    h_new = o_g * jnp.tanh(c_new)

    # ---- EpsilonGreedyLSTM extra gating on top of the cell outputs ----
    # forget_gate = input_gate = output_gate = sigmoid(h_new)
    # TODO(synk): the stochastic `random.random() < epsilon` branch (replace a
    # gate with uniform noise) is host-side control flow; only the
    # deterministic pass-through path is implemented here.
    gate = jax.nn.sigmoid(h_new)
    c_fin = gate * c_new + gate * jnp.tanh(h_new)
    h_fin = gate * jnp.tanh(c_fin)

    # Carry state for the next timestep / final writeback.
    h_ref[...] = h_fin
    c_ref[...] = c_fin


def prepare_params(w_ih, w_hh, b_ih, b_hh):
    """One-time packing of LSTMCell params into a fused, lane-aligned layout.

    w_ih: (4H, In), w_hh: (4H, H), b_*: (4H,)  ->  w_cat: (256, 512), bias: (1, 512)
    Rows 0..In-1 of w_cat hold w_ih^T, rows 128..128+H-1 hold w_hh^T; each gate
    occupies its own 128-lane column block.
    """
    In = w_ih.shape[1]
    H = w_hh.shape[1]
    b = (b_ih + b_hh).astype(jnp.float32)
    w_cat = jnp.zeros((KPAD, GPAD), jnp.float32)
    bias = jnp.zeros((1, GPAD), jnp.float32)
    for g in range(4):
        w_cat = w_cat.at[:In, g * LANE:g * LANE + H].set(
            w_ih[g * H:(g + 1) * H, :].T.astype(jnp.float32))
        w_cat = w_cat.at[LANE:LANE + H, g * LANE:g * LANE + H].set(
            w_hh[g * H:(g + 1) * H, :].T.astype(jnp.float32))
        bias = bias.at[0, g * LANE:g * LANE + H].set(b[g * H:(g + 1) * H])
    return w_cat, bias


@jax.jit
def epsilon_greedy_lstm_seq(x_seq, hx, cx, w_cat, bias):
    """Run the cell over a sequence inside ONE kernel launch.

    x_seq: (T, B, In), hx/cx: (B, H).  Returns final (hx, cx), shape (B, H).
    T=1 is exactly the module's single-step forward.
    """
    T, B, In = x_seq.shape
    H = hx.shape[1]
    Bp = max(8, ((B + 7) // 8) * 8)   # sublane-aligned batch rows

    # Lane/sublane-dense padded buffers (padded lanes/rows stay exactly zero
    # through the whole recurrence, so no masking is needed in-kernel).
    x_pad = jnp.zeros((T, Bp, LANE), jnp.float32).at[:, :B, :In].set(x_seq)
    h_pad = jnp.zeros((Bp, LANE), jnp.float32).at[:B, :H].set(hx)
    c_pad = jnp.zeros((Bp, LANE), jnp.float32).at[:B, :H].set(cx)

    h_out, c_out = pl.pallas_call(
        _eps_greedy_lstm_kernel,
        out_shape=(
            jax.ShapeDtypeStruct((Bp, LANE), jnp.float32),
            jax.ShapeDtypeStruct((Bp, LANE), jnp.float32),
        ),
        grid_spec=pltpu.PrefetchScalarGridSpec(
            num_scalar_prefetch=0,
            grid=(T,),
            in_specs=[
                pl.BlockSpec((1, Bp, LANE), lambda t: (t, 0, 0)),   # x_t stream
                pl.BlockSpec((Bp, LANE), lambda t: (0, 0)),         # h0 (resident)
                pl.BlockSpec((Bp, LANE), lambda t: (0, 0)),         # c0 (resident)
                pl.BlockSpec((KPAD, GPAD), lambda t: (0, 0)),       # fused weights
                pl.BlockSpec((1, GPAD), lambda t: (0, 0)),          # fused bias
            ],
            out_specs=(
                pl.BlockSpec((Bp, LANE), lambda t: (0, 0)),         # h carry/out
                pl.BlockSpec((Bp, LANE), lambda t: (0, 0)),         # c carry/out
            ),
        ),
        input_output_aliases={1: 0, 2: 1},   # hx -> h_out, cx -> c_out
        compiler_params=pltpu.CompilerParams(
            dimension_semantics=("arbitrary",)),  # sequential recurrence over T
    )(x_pad, h_pad, c_pad, w_cat, bias)

    return h_out[:B, :H], c_out[:B, :H]


if __name__ == "__main__":
    input_size = 10
    hidden_size = 20
    batch = 1
    T = 4

    key = jax.random.PRNGKey(0)
    k_x, k_wih, k_whh, k_bih, k_bhh = jax.random.split(key, 5)

    # PyTorch LSTMCell default init: U(-1/sqrt(H), 1/sqrt(H)).
    bound = 1.0 / (hidden_size ** 0.5)
    w_ih = jax.random.uniform(k_wih, (4 * hidden_size, input_size),
                              jnp.float32, -bound, bound)
    w_hh = jax.random.uniform(k_whh, (4 * hidden_size, hidden_size),
                              jnp.float32, -bound, bound)
    b_ih = jax.random.uniform(k_bih, (4 * hidden_size,), jnp.float32, -bound, bound)
    b_hh = jax.random.uniform(k_bhh, (4 * hidden_size,), jnp.float32, -bound, bound)

    x_seq = jax.random.normal(k_x, (T, batch, input_size), jnp.float32)
    hx0 = jnp.zeros((batch, hidden_size), jnp.float32)
    cx0 = jnp.zeros((batch, hidden_size), jnp.float32)

    # One-time parameter packing (hoisted out of the per-call path).
    w_cat, bias = prepare_params(w_ih, w_hh, b_ih, b_hh)

    # Single step (T=1) == module forward; multi-step recurrence in one launch.
    h1, c1 = epsilon_greedy_lstm_seq(x_seq[:1], hx0, cx0, w_cat, bias)
    hT, cT = epsilon_greedy_lstm_seq(x_seq, hx0, cx0, w_cat, bias)
    jax.block_until_ready((h1, c1, hT, cT))

    # Pure-JAX reference (same deterministic epsilon-greedy branch).
    def ref_step(x, hx, cx):
        gates = x @ w_ih.T + hx @ w_hh.T + b_ih + b_hh
        i, f, g, o = jnp.split(gates, 4, axis=1)
        i, f, g, o = (jax.nn.sigmoid(i), jax.nn.sigmoid(f),
                      jnp.tanh(g), jax.nn.sigmoid(o))
        c_new = f * cx + i * g
        h_new = o * jnp.tanh(c_new)
        gate = jax.nn.sigmoid(h_new)
        c_fin = gate * c_new + gate * jnp.tanh(h_new)
        h_fin = gate * jnp.tanh(c_fin)
        return h_fin, c_fin

    h_ref, c_ref = ref_step(x_seq[0], hx0, cx0)
    assert jnp.allclose(h1, h_ref, atol=1e-5), "h mismatch (T=1)"
    assert jnp.allclose(c1, c_ref, atol=1e-5), "c mismatch (T=1)"

    h_r, c_r = hx0, cx0
    for t in range(T):
        h_r, c_r = ref_step(x_seq[t], h_r, c_r)
    assert jnp.allclose(hT, h_r, atol=1e-5), "h mismatch (T=4)"
    assert jnp.allclose(cT, c_r, atol=1e-5), "c mismatch (T=4)"

    print("KERNEL_OK")
</pallas_src>

<mosaic_0001>
module attributes {stable_mosaic.version = 11 : i64} {
  func.func @_eps_greedy_lstm_kernel(%arg0: i32, %arg1: memref<1x8x128xf32, #tpu.memory_space<vmem>>, %arg2: memref<8x128xf32, #tpu.memory_space<vmem>>, %arg3: memref<8x128xf32, #tpu.memory_space<vmem>>, %arg4: memref<256x512xf32, #tpu.memory_space<vmem>>, %arg5: memref<1x512xf32, #tpu.memory_space<vmem>>, %arg6: memref<8x128xf32, #tpu.memory_space<vmem>>, %arg7: memref<8x128xf32, #tpu.memory_space<vmem>>) attributes {dimension_semantics = [#tpu.dimension_semantics<arbitrary>], iteration_bounds = array<i64: 1>, scalar_prefetch = 0 : i64, scratch_operands = 0 : i64, tpu.core_type = #tpu.core_type<tc>, window_params = [{transform_indices = @transform_0, window_bounds = array<i64: 1, 8, 128>}, {pipeline_mode = #tpu.pipeline_mode<synchronous>, transform_indices = @transform_1, window_bounds = array<i64: 8, 128>}, {pipeline_mode = #tpu.pipeline_mode<synchronous>, transform_indices = @transform_2, window_bounds = array<i64: 8, 128>}, {pipeline_mode = #tpu.pipeline_mode<synchronous>, transform_indices = @transform_3, window_bounds = array<i64: 256, 512>}, {pipeline_mode = #tpu.pipeline_mode<synchronous>, transform_indices = @transform_4, window_bounds = array<i64: 1, 512>}, {pipeline_mode = #tpu.pipeline_mode<synchronous>, transform_indices = @transform_5, window_bounds = array<i64: 8, 128>}, {pipeline_mode = #tpu.pipeline_mode<synchronous>, transform_indices = @transform_6, window_bounds = array<i64: 8, 128>}]} {
    %c0_i32 = arith.constant 0 : i32
    %0 = arith.cmpi eq, %arg0, %c0_i32 : i32
    %1 = arith.extui %0 : i1 to i32
    %c0_i32_0 = arith.constant 0 : i32
    %2 = arith.cmpi ne, %1, %c0_i32_0 : i32
    scf.if %2 {
      %c0_19 = arith.constant 0 : index
      %c0_20 = arith.constant 0 : index
      %51 = vector.load %arg2[%c0_19, %c0_20] : memref<8x128xf32, #tpu.memory_space<vmem>>, vector<8x128xf32>
      %c0_21 = arith.constant 0 : index
      %c0_22 = arith.constant 0 : index
      %52 = vector.load %arg6[%c0_21, %c0_22] : memref<8x128xf32, #tpu.memory_space<vmem>>, vector<8x128xf32>
      tpu.vector_store %arg6[%c0_21, %c0_22], %51 {strides = array<i32>} : memref<8x128xf32, #tpu.memory_space<vmem>>, vector<8x128xf32>,
      %c0_23 = arith.constant 0 : index
      %c0_24 = arith.constant 0 : index
      %53 = vector.load %arg3[%c0_23, %c0_24] : memref<8x128xf32, #tpu.memory_space<vmem>>, vector<8x128xf32>
      %c0_25 = arith.constant 0 : index
      %c0_26 = arith.constant 0 : index
      %54 = vector.load %arg7[%c0_25, %c0_26] : memref<8x128xf32, #tpu.memory_space<vmem>>, vector<8x128xf32>
      tpu.vector_store %arg7[%c0_25, %c0_26], %53 {strides = array<i32>} : memref<8x128xf32, #tpu.memory_space<vmem>>, vector<8x128xf32>,
    } else {
    }
    %c0 = arith.constant 0 : index
    %c0_1 = arith.constant 0 : index
    %3 = vector.load %arg6[%c0, %c0_1] : memref<8x128xf32, #tpu.memory_space<vmem>>, vector<8x128xf32>
    %c0_2 = arith.constant 0 : index
    %c0_3 = arith.constant 0 : index
    %4 = vector.load %arg7[%c0_2, %c0_3] : memref<8x128xf32, #tpu.memory_space<vmem>>, vector<8x128xf32>
    %c0_4 = arith.constant 0 : index
    %c0_5 = arith.constant 0 : index
    %c0_6 = arith.constant 0 : index
    %5 = vector.load %arg1[%c0_4, %c0_5, %c0_6] : memref<1x8x128xf32, #tpu.memory_space<vmem>>, vector<1x8x128xf32>
    %6 = vector.shape_cast %5 : vector<1x8x128xf32> to vector<8x128xf32>
    %7 = tpu.concatenate %6, %3 in 1 : vector<8x128xf32>, vector<8x128xf32> -> vector<8x256xf32>
    %c0_7 = arith.constant 0 : index
    %c0_8 = arith.constant 0 : index
    %8 = vector.load %arg4[%c0_7, %c0_8] : memref<256x512xf32, #tpu.memory_space<vmem>>, vector<256x512xf32>
    %cst = arith.constant dense<0.000000e+00> : vector<8x512xf32>
    %9 = tpu.matmul %7, %8, %cst {dimension_numbers = #tpu.dot_dimension_numbers<[1], [0], [0], [1], [0, 0, 1, 1], [], []>} : vector<8x256xf32>, vector<256x512xf32>, vector<8x512xf32> -> vector<8x512xf32>
    %c0_9 = arith.constant 0 : index
    %c0_10 = arith.constant 0 : index
    %10 = vector.load %arg5[%c0_9, %c0_10] : memref<1x512xf32, #tpu.memory_space<vmem>>, vector<1x512xf32>
    %11 = vector.broadcast %10 : vector<1x512xf32> to vector<8x512xf32>
    %12 = arith.addf %9, %11 : vector<8x512xf32>
    %13 = vector.extract_strided_slice %12 {offsets = [0, 0], sizes = [8, 128], strides = [1, 1]} : vector<8x512xf32> to vector<8x128xf32>
    %14 = arith.negf %13 : vector<8x128xf32>
    %15 = math.exp %14 : vector<8x128xf32>
    %cst_11 = arith.constant 1.000000e+00 : f32
    %16 = vector.broadcast %cst_11 : f32 to vector<8x128xf32>
    %17 = arith.addf %16, %15 : vector<8x128xf32>
    %18 = arith.divf %16, %17 : vector<8x128xf32>
    %19 = vector.extract_strided_slice %12 {offsets = [0, 128], sizes = [8, 128], strides = [1, 1]} : vector<8x512xf32> to vector<8x128xf32>
    %20 = arith.negf %19 : vector<8x128xf32>
    %21 = math.exp %20 : vector<8x128xf32>
    %cst_12 = arith.constant 1.000000e+00 : f32
    %22 = vector.broadcast %cst_12 : f32 to vector<8x128xf32>
    %23 = arith.addf %22, %21 : vector<8x128xf32>
    %24 = arith.divf %22, %23 : vector<8x128xf32>
    %25 = vector.extract_strided_slice %12 {offsets = [0, 256], sizes = [8, 128], strides = [1, 1]} : vector<8x512xf32> to vector<8x128xf32>
    %26 = math.tanh %25 : vector<8x128xf32>
    %27 = vector.extract_strided_slice %12 {offsets = [0, 384], sizes = [8, 128], strides = [1, 1]} : vector<8x512xf32> to vector<8x128xf32>
    %28 = arith.negf %27 : vector<8x128xf32>
    %29 = math.exp %28 : vector<8x128xf32>
    %cst_13 = arith.constant 1.000000e+00 : f32
    %30 = vector.broadcast %cst_13 : f32 to vector<8x128xf32>
    %31 = arith.addf %30, %29 : vector<8x128xf32>
    %32 = arith.divf %30, %31 : vector<8x128xf32>
    %33 = arith.mulf %24, %4 : vector<8x128xf32>
    %34 = arith.mulf %18, %26 : vector<8x128xf32>
    %35 = arith.addf %33, %34 : vector<8x128xf32>
    %36 = math.tanh %35 : vector<8x128xf32>
    %37 = arith.mulf %32, %36 : vector<8x128xf32>
    %38 = arith.negf %37 : vector<8x128xf32>
    %39 = math.exp %38 : vector<8x128xf32>
    %cst_14 = arith.constant 1.000000e+00 : f32
    %40 = vector.broadcast %cst_14 : f32 to vector<8x128xf32>
    %41 = arith.addf %40, %39 : vector<8x128xf32>
    %42 = arith.divf %40, %41 : vector<8x128xf32>
    %43 = arith.mulf %42, %35 : vector<8x128xf32>
    %44 = math.tanh %37 : vector<8x128xf32>
    %45 = arith.mulf %42, %44 : vector<8x128xf32>
    %46 = arith.addf %43, %45 : vector<8x128xf32>
    %47 = math.tanh %46 : vector<8x128xf32>
    %48 = arith.mulf %42, %47 : vector<8x128xf32>
    %c0_15 = arith.constant 0 : index
    %c0_16 = arith.constant 0 : index
    %49 = vector.load %arg6[%c0_15, %c0_16] : memref<8x128xf32, #tpu.memory_space<vmem>>, vector<8x128xf32>
    tpu.vector_store %arg6[%c0_15, %c0_16], %48 {strides = array<i32>} : memref<8x128xf32, #tpu.memory_space<vmem>>, vector<8x128xf32>,
    %c0_17 = arith.constant 0 : index
    %c0_18 = arith.constant 0 : index
    %50 = vector.load %arg7[%c0_17, %c0_18] : memref<8x128xf32, #tpu.memory_space<vmem>>, vector<8x128xf32>
    tpu.vector_store %arg7[%c0_17, %c0_18], %46 {strides = array<i32>} : memref<8x128xf32, #tpu.memory_space<vmem>>, vector<8x128xf32>,
    return
  }
  func.func @transform_0(%arg0: i32) -> (i32, i32, i32) {
    %c0_i32 = arith.constant 0 : i32
    %c0_i32_0 = arith.constant 0 : i32
    %c0_i32_1 = arith.constant 0 : i32
    return %arg0, %c0_i32, %c0_i32_0 : i32, i32, i32
  }
  func.func @transform_1(%arg0: i32) -> (i32, i32) {
    %c0_i32 = arith.constant 0 : i32
    %c0_i32_0 = arith.constant 0 : i32
    %c0_i32_1 = arith.constant 0 : i32
    return %c0_i32, %c0_i32_0 : i32, i32
  }
  func.func @transform_2(%arg0: i32) -> (i32, i32) {
    %c0_i32 = arith.constant 0 : i32
    %c0_i32_0 = arith.constant 0 : i32
    %c0_i32_1 = arith.constant 0 : i32
    return %c0_i32, %c0_i32_0 : i32, i32
  }
  func.func @transform_3(%arg0: i32) -> (i32, i32) {
    %c0_i32 = arith.constant 0 : i32
    %c0_i32_0 = arith.constant 0 : i32
    %c0_i32_1 = arith.constant 0 : i32
    return %c0_i32, %c0_i32_0 : i32, i32
  }
  func.func @transform_4(%arg0: i32) -> (i32, i32) {
    %c0_i32 = arith.constant 0 : i32
    %c0_i32_0 = arith.constant 0 : i32
    %c0_i32_1 = arith.constant 0 : i32
    return %c0_i32, %c0_i32_0 : i32, i32
  }
  func.func @transform_5(%arg0: i32) -> (i32, i32) {
    %c0_i32 = arith.constant 0 : i32
    %c0_i32_0 = arith.constant 0 : i32
    %c0_i32_1 = arith.constant 0 : i32
    return %c0_i32, %c0_i32_0 : i32, i32
  }
  func.func @transform_6(%arg0: i32) -> (i32, i32) {
    %c0_i32 = arith.constant 0 : i32
    %c0_i32_0 = arith.constant 0 : i32
    %c0_i32_1 = arith.constant 0 : i32
    return %c0_i32, %c0_i32_0 : i32, i32
  }
}

</mosaic_0001>

<bundles_post_ra>
// kernel: epsilon_greedy_lstm_seq.1
= control target key start
LH: loop header
LB: loop body
LE: loop exit
PB: predicated region body
PF: predicated region fallthrough
CT: control target
= control target key end

     0   :  { %12 = vsyncpa [#allocation3], 0  ;;  %s569_s21 = smov [#allocation2]   ;;  %s637_s0 = inlined_call_operand.vmem [shape: f32[1,8,128], index: 0, kind: input, shape index: {}]   ;;  %s638_s1 = inlined_call_operand.vmem [shape: f32[8,128], index: 1, kind: input, shape index: {}, may-alias: {1,5}]   ;;  %s639_s2 = inlined_call_operand.vmem [shape: f32[8,128], index: 2, kind: input, shape index: {}, may-alias: {2,6}]   ;;  %s640_s3 = inlined_call_operand.hbm [shape: f32[256,512], index: 3, kind: input, shape index: {}]   ;;  %s641_s4 = inlined_call_operand.vmem [shape: f32[1,512], index: 4, kind: input, shape index: {}]   ;;  %s642_s5 = inlined_call_operand.vmem [shape: f32[8,128], index: 5, kind: output, shape index: {0}, may-alias: {1,5}]   ;;  %s643_s6 = inlined_call_operand.vmem [shape: f32[8,128], index: 6, kind: output, shape index: {1}, may-alias: {2,6}]  }
   0x1   :  { %s24_s22 = sshll.u32 %s569_s21, 4  ;;  %s545_s25 = scalar_lea.hbm %s640_s3, 16384  ;;  %s25_s22 = int_to_ptr.vmem [resolvable:$true] %s24_s22 }
   0x2   :  { %p546_p0 = scmp.ne.s32.totalorder %s640_s3, %s545_s25  ;;  %p549_p1 = scmp.lt.u32.totalorder %s545_s25, %s640_s3 }
   0x4   :  { %p551_p2 = pnand %p549_p1, %p546_p0 }
   0x6   :  { %554 = shalt.err (!%p551_p2)
}
   0x7   :  { %s555_s30 = scalar_lea.vmem %s25_s22, 16384  ;;  %p560_p4 = scmp.lt.s32.totalorder %s25_s22, %s25_s22 }
   0x8   :  { %p556_p3 = scmp.ne.s32.totalorder %s25_s22, %s555_s30  ;;  %p561_p5 = scmp.lt.s32.totalorder %s555_s30, %s555_s30 }
   0xa   :  { %p562_p6 = por %p561_p5, %p560_p4 }
   0xc   :  { %p563_p7 = pnand %p562_p6, %p556_p3 }
   0xe   :  { %566 = shalt.err (!%p563_p7)
}
   0xf   :  { %s570_s7 = smov 512   ;;  %s571_s8 = smov 32  }
  0x10   :  { %30 = dma.hbm_to_vmem [thread:$0]  %s640_s3, 16384, %s25_s22, [#allocation3], %s570_s7, %s570_s7, %s571_s8  }
  0x11   :  { %567 = dma.done.wait [#allocation3], 16384  }
  0x12   :  { %568 = vsyncadd [#allocation3], 4294950912  ;;  %v48_v0 = vld [vmem:[#allocation2 + $0x8] sm:$0xff]  ;;  %v47_v2 = vld [vmem:[#allocation2] sm:$0xff] }
  0x13   :  { %v52_v1 = vld [vmem:[#allocation2 + $0x28] sm:$0xff]  ;;  %v51_v4 = vld [vmem:[#allocation2 + $0x20] sm:$0xff]  ;;  %v50_v18 = vld [vmem:[#allocation2 + $0x18] sm:$0xff] }
  0x14   :  { %v390_v3 = vpack.c.bf16 %v52_v1, %v48_v0  ;;  %v56_v5 = vld [vmem:[#allocation2 + $0x48] sm:$0xff]  ;;  %v392_v7 = vpack.c.bf16 %v51_v4, %v47_v2  ;;  %v55_v9 = vld [vmem:[#allocation2 + $0x40] sm:$0xff]  ;;  %v54_v19 = vld [vmem:[#allocation2 + $0x38] sm:$0xff] }
  0x15   :  { %v60_v6 = vld [vmem:[#allocation2 + $0x68] sm:$0xff]  ;;  %v59_v10 = vld [vmem:[#allocation2 + $0x60] sm:$0xff]  ;;  %v454_v21 = vpack.c.bf16 %v54_v19, %v50_v18  ;;  %v49_v22 = vld [vmem:[#allocation2 + $0x10] sm:$0xff] }
  0x16   :  { %v394_v8 = vpack.c.bf16 %v60_v6, %v56_v5  ;;  %v64_v11 = vld [vmem:[#allocation2 + $0x88] sm:$0xff]  ;;  %391 = vmatprep.subr.bf16.mxu0 %v390_v3  ;;  %v396_v13 = vpack.c.bf16 %v59_v10, %v55_v9  ;;  %v63_v14 = vld [vmem:[#allocation2 + $0x80] sm:$0xff]  ;;  %v53_v23 = vld [vmem:[#allocation2 + $0x30] sm:$0xff] }
  0x17   :  { %v68_v12 = vld [vmem:[#allocation2 + $0xa8] sm:$0xff]  ;;  %393 = vmatpush1.bf16.msra.mxu0 %v392_v7  ;;  %v67_v15 = vld [vmem:[#allocation2 + $0xa0] sm:$0xff]  ;;  %v456_v24 = vpack.c.bf16 %v53_v23, %v49_v22  ;;  %455 = vmatprep.subr.bf16.mxu1 %v454_v21  ;;  %v58_v26 = vld [vmem:[#allocation2 + $0x58] sm:$0xff] }
  0x18   :  { %395 = vmatprep.subr.bf16.mxu0 %v394_v8  ;;  %v398_v16 = vpack.c.bf16 %v68_v12, %v64_v11  ;;  %v72_v17 = vld [vmem:[#allocation2 + $0xc8] sm:$0xff]  ;;  %v400_v25 = vpack.c.bf16 %v67_v15, %v63_v14  ;;  %v62_v27 = vld [vmem:[#allocation2 + $0x78] sm:$0xff]  ;;  %v57_v28 = vld [vmem:[#allocation2 + $0x50] sm:$0xff] }
  0x19   :  { %v76_v20 = vld [vmem:[#allocation2 + $0xe8] sm:$0xff]  ;;  %v71_v30 = vld [vmem:[#allocation2 + $0xc0] sm:$0xff]  ;;  %457 = vmatpush1.bf16.msra.mxu1 %v456_v24  ;;  %v458_v32 = vpack.c.bf16 %v62_v27, %v58_v26  ;;  %v61_v33 = vld [vmem:[#allocation2 + $0x70] sm:$0xff] }
  0x1a   :  { %v402_v29 = vpack.c.bf16 %v76_v20, %v72_v17  ;;  %v75_v31 = vld [vmem:[#allocation2 + $0xe0] sm:$0xff]  ;;  %v80_v34 = vld [vmem:[#allocation2 + $0x108] sm:$0xff]  ;;  %v460_v36 = vpack.c.bf16 %v61_v33, %v57_v28  ;;  %v66_v37 = vld [vmem:[#allocation2 + $0x98] sm:$0xff] }
  0x1b   :  { %397 = vmatpush1.bf16.msra.mxu0 %v396_v13  ;;  %v84_v35 = vld [vmem:[#allocation2 + $0x128] sm:$0xff]  ;;  %459 = vmatprep.subr.bf16.mxu1 %v458_v32  ;;  %v70_v38 = vld [vmem:[#allocation2 + $0xb8] sm:$0xff]  ;;  %v65_v39 = vld [vmem:[#allocation2 + $0x90] sm:$0xff]  ;;  %v404_v41 = vpack.c.bf16 %v75_v31, %v71_v30 }
  0x1c   :  { %399 = vmatprep.subr.bf16.mxu0 %v398_v16  ;;  %v69_v40 = vld [vmem:[#allocation2 + $0xb0] sm:$0xff]  ;;  %v79_v42 = vld [vmem:[#allocation2 + $0x100] sm:$0xff]  ;;  %v462_v44 = vpack.c.bf16 %v70_v38, %v66_v37  ;;  %v406_v45 = vpack.c.bf16 %v84_v35, %v80_v34  ;;  %v88_v46 = vld [vmem:[#allocation2 + $0x148] sm:$0xff] }
  0x1d   :  { %v83_v43 = vld [vmem:[#allocation2 + $0x120] sm:$0xff]  ;;  %461 = vmatpush1.bf16.msra.mxu1 %v460_v36  ;;  %v464_v47 = vpack.c.bf16 %v69_v40, %v65_v39  ;;  %v74_v48 = vld [vmem:[#allocation2 + $0xd8] sm:$0xff]  ;;  %v92_v50 = vld [vmem:[#allocation2 + $0x168] sm:$0xff] }
  0x1e   :  { %v78_v49 = vld [vmem:[#allocation2 + $0xf8] sm:$0xff]  ;;  %463 = vmatprep.subr.bf16.mxu1 %v462_v44  ;;  %v73_v52 = vld [vmem:[#allocation2 + $0xd0] sm:$0xff]  ;;  %v408_v54 = vpack.c.bf16 %v83_v43, %v79_v42  ;;  %v410_v57 = vpack.c.bf16 %v92_v50, %v88_v46  ;;  %v87_v58 = vld [vmem:[#allocation2 + $0x140] sm:$0xff] }
  0x1f   :  { %401 = vmatpush1.bf16.msra.mxu0 %v400_v25  ;;  %v466_v51 = vpack.c.bf16 %v78_v49, %v74_v48  ;;  %v77_v53 = vld [vmem:[#allocation2 + $0xf0] sm:$0xff]  ;;  %v82_v55 = vld [vmem:[#allocation2 + $0x118] sm:$0xff]  ;;  %v91_v59 = vld [vmem:[#allocation2 + $0x160] sm:$0xff] }
  0x20   :  { %403 = vmatprep.subr.bf16.mxu0 %v402_v29  ;;  %v86_v56 = vld [vmem:[#allocation2 + $0x138] sm:$0xff]  ;;  %v96_v60 = vld [vmem:[#allocation2 + $0x188] sm:$0xff]  ;;  %v468_v61 = vpack.c.bf16 %v77_v53, %v73_v52  ;;  %v81_v0 = vld [vmem:[#allocation2 + $0x110] sm:$0xff]  ;;  %v412_v4 = vpack.c.bf16 %v91_v59, %v87_v58 }
  0x21   :  { %465 = vmatpush1.bf16.msra.mxu1 %v464_v47  ;;  %v100_v62 = vld [vmem:[#allocation2 + $0x1a8] sm:$0xff]  ;;  %v470_v63 = vpack.c.bf16 %v86_v56, %v82_v55  ;;  %v85_v1 = vld [vmem:[#allocation2 + $0x130] sm:$0xff]  ;;  %v90_v2 = vld [vmem:[#allocation2 + $0x158] sm:$0xff] }
  0x22   :  { %467 = vmatprep.subr.bf16.mxu1 %v466_v51  ;;  %v94_v3 = vld [vmem:[#allocation2 + $0x178] sm:$0xff]  ;;  %v414_v5 = vpack.c.bf16 %v100_v62, %v96_v60  ;;  %v95_v6 = vld [vmem:[#allocation2 + $0x180] sm:$0xff]  ;;  %v104_v8 = vld [vmem:[#allocation2 + $0x1c8] sm:$0xff]  ;;  %v472_v9 = vpack.c.bf16 %v85_v1, %v81_v0 }
  0x23   :  { %405 = vmatpush1.bf16.msra.mxu0 %v404_v41  ;;  %v99_v7 = vld [vmem:[#allocation2 + $0x1a0] sm:$0xff]  ;;  %v108_v10 = vld [vmem:[#allocation2 + $0x1e8] sm:$0xff]  ;;  %v474_v11 = vpack.c.bf16 %v94_v3, %v90_v2  ;;  %v89_v12 = vld [vmem:[#allocation2 + $0x150] sm:$0xff] }
  0x24   :  { %407 = vmatprep.subr.bf16.mxu0 %v406_v45  ;;  %v93_v13 = vld [vmem:[#allocation2 + $0x170] sm:$0xff]  ;;  %v98_v14 = vld [vmem:[#allocation2 + $0x198] sm:$0xff]  ;;  %v416_v16 = vpack.c.bf16 %v99_v7, %v95_v6  ;;  %v418_v17 = vpack.c.bf16 %v108_v10, %v104_v8  ;;  %v103_v18 = vld [vmem:[#allocation2 + $0x1c0] sm:$0xff] }
  0x25   :  { %469 = vmatpush1.bf16.msra.mxu1 %v468_v61  ;;  %v102_v15 = vld [vmem:[#allocation2 + $0x1b8] sm:$0xff]  ;;  %v107_v19 = vld [vmem:[#allocation2 + $0x1e0] sm:$0xff]  ;;  %v112_v20 = vld [vmem:[#allocation2 + $0x208] sm:$0xff]  ;;  %v476_v21 = vpack.c.bf16 %v93_v13, %v89_v12 }
  0x26   :  { %471 = vmatprep.subr.bf16.mxu1 %v470_v63  ;;  %v116_v22 = vld [vmem:[#allocation2 + $0x228] sm:$0xff]  ;;  %v478_v23 = vpack.c.bf16 %v102_v15, %v98_v14  ;;  %v97_v24 = vld [vmem:[#allocation2 + $0x190] sm:$0xff]  ;;  %v106_v26 = vld [vmem:[#allocation2 + $0x1d8] sm:$0xff]  ;;  %v420_v28 = vpack.c.bf16 %v107_v19, %v103_v18 }
  0x27   :  { %409 = vmatpush1.bf16.msra.mxu0 %v408_v54  ;;  %v101_v25 = vld [vmem:[#allocation2 + $0x1b0] sm:$0xff]  ;;  %v110_v27 = vld [vmem:[#allocation2 + $0x1f8] sm:$0xff]  ;;  %v422_v29 = vpack.c.bf16 %v116_v22, %v112_v20  ;;  %v111_v30 = vld [vmem:[#allocation2 + $0x200] sm:$0xff] }
  0x28   :  { %411 = vmatprep.subr.bf16.mxu0 %v410_v57  ;;  %v115_v31 = vld [vmem:[#allocation2 + $0x220] sm:$0xff]  ;;  %v120_v32 = vld [vmem:[#allocation2 + $0x248] sm:$0xff]  ;;  %v480_v33 = vpack.c.bf16 %v101_v25, %v97_v24  ;;  %v482_v35 = vpack.c.bf16 %v110_v27, %v106_v26  ;;  %v105_v36 = vld [vmem:[#allocation2 + $0x1d0] sm:$0xff] }
  0x29   :  { %473 = vmatpush1.bf16.msra.mxu1 %v472_v9  ;;  %v124_v34 = vld [vmem:[#allocation2 + $0x268] sm:$0xff]  ;;  %v109_v37 = vld [vmem:[#allocation2 + $0x1f0] sm:$0xff]  ;;  %v114_v38 = vld [vmem:[#allocation2 + $0x218] sm:$0xff]  ;;  %v424_v40 = vpack.c.bf16 %v115_v31, %v111_v30 }
  0x2a   :  { %475 = vmatprep.subr.bf16.mxu1 %v474_v11  ;;  %v118_v39 = vld [vmem:[#allocation2 + $0x238] sm:$0xff]  ;;  %v426_v41 = vpack.c.bf16 %v124_v34, %v120_v32  ;;  %v119_v42 = vld [vmem:[#allocation2 + $0x240] sm:$0xff]  ;;  %v128_v44 = vld [vmem:[#allocation2 + $0x288] sm:$0xff]  ;;  %v484_v45 = vpack.c.bf16 %v109_v37, %v105_v36 }
  0x2b   :  { %413 = vmatpush1.bf16.msra.mxu0 %v412_v4  ;;  %v123_v43 = vld [vmem:[#allocation2 + $0x260] sm:$0xff]  ;;  %v132_v46 = vld [vmem:[#allocation2 + $0x2a8] sm:$0xff]  ;;  %v486_v47 = vpack.c.bf16 %v118_v39, %v114_v38  ;;  %v113_v48 = vld [vmem:[#allocation2 + $0x210] sm:$0xff] }
  0x2c   :  { %415 = vmatprep.subr.bf16.mxu0 %v414_v5  ;;  %v117_v49 = vld [vmem:[#allocation2 + $0x230] sm:$0xff]  ;;  %v122_v50 = vld [vmem:[#allocation2 + $0x258] sm:$0xff]  ;;  %v428_v52 = vpack.c.bf16 %v123_v43, %v119_v42  ;;  %v127_v53 = vld [vmem:[#allocation2 + $0x280] sm:$0xff]  ;;  %v430_v54 = vpack.c.bf16 %v132_v46, %v128_v44 }
  0x2d   :  { %477 = vmatpush1.bf16.msra.mxu1 %v476_v21  ;;  %v126_v51 = vld [vmem:[#allocation2 + $0x278] sm:$0xff]  ;;  %v131_v55 = vld [vmem:[#allocation2 + $0x2a0] sm:$0xff]  ;;  %v136_v56 = vld [vmem:[#allocation2 + $0x2c8] sm:$0xff]  ;;  %v488_v58 = vpack.c.bf16 %v117_v49, %v113_v48 }
  0x2e   :  { %479 = vmatprep.subr.bf16.mxu1 %v478_v23  ;;  %v140_v57 = vld [vmem:[#allocation2 + $0x2e8] sm:$0xff]  ;;  %v490_v59 = vpack.c.bf16 %v126_v51, %v122_v50  ;;  %v121_v60 = vld [vmem:[#allocation2 + $0x250] sm:$0xff]  ;;  %v40_v62 = vld [vmem:[%s638_s1] sm:$0xff]  ;;  %v432_v1 = vpack.c.bf16 %v131_v55, %v127_v53 }
  0x2f   :  { %417 = vmatpush1.bf16.msra.mxu0 %v416_v16  ;;  %v125_v61 = vld [vmem:[#allocation2 + $0x270] sm:$0xff]  ;;  %v130_v63 = vld [vmem:[#allocation2 + $0x298] sm:$0xff]  ;;  %261 = vmatprep.mubr.f32.mxu0 %v40_v62  ;;  %v434_v2 = vpack.c.bf16 %v140_v57, %v136_v56  ;;  %v135_v3 = vld [vmem:[#allocation2 + $0x2c0] sm:$0xff] }
  0x30   :  { %419 = vmatprep.subr.bf16.mxu0 %v418_v17  ;;  %v134_v0 = vld [vmem:[#allocation2 + $0x2b8] sm:$0xff]  ;;  %332 = vmatprep.mubr.f32.mxu1 %v40_v62  ;;  %v139_v4 = vld [vmem:[#allocation2 + $0x2e0] sm:$0xff]  ;;  %v144_v5 = vld [vmem:[#allocation2 + $0x308] sm:$0xff]  ;;  %v492_v6 = vpack.c.bf16 %v125_v61, %v121_v60 }
  0x31   :  { %481 = vmatpush1.bf16.msra.mxu1 %v480_v33  ;;  %v148_v7 = vld [vmem:[#allocation2 + $0x328] sm:$0xff]  ;;  %v494_v8 = vpack.c.bf16 %v134_v0, %v130_v63  ;;  %v129_v9 = vld [vmem:[#allocation2 + $0x290] sm:$0xff]  ;;  %v138_v11 = vld [vmem:[#allocation2 + $0x2d8] sm:$0xff]  ;;  %v436_v13 = vpack.c.bf16 %v139_v4, %v135_v3 }
  0x32   :  { %483 = vmatprep.subr.bf16.mxu1 %v482_v35  ;;  %v133_v10 = vld [vmem:[#allocation2 + $0x2b0] sm:$0xff]  ;;  %v142_v12 = vld [vmem:[#allocation2 + $0x2f8] sm:$0xff]  ;;  %v438_v14 = vpack.c.bf16 %v148_v7, %v144_v5  ;;  %v143_v15 = vld [vmem:[#allocation2 + $0x300] sm:$0xff] }
  0x33   :  { %421 = vmatpush1.bf16.msra.mxu0 %v420_v28  ;;  %v147_v16 = vld [vmem:[#allocation2 + $0x320] sm:$0xff]  ;;  %v152_v17 = vld [vmem:[#allocation2 + $0x348] sm:$0xff]  ;;  %v496_v18 = vpack.c.bf16 %v133_v10, %v129_v9  ;;  %v498_v20 = vpack.c.bf16 %v142_v12, %v138_v11  ;;  %v137_v21 = vld [vmem:[#allocation2 + $0x2d0] sm:$0xff] }
  0x34   :  { %423 = vmatprep.subr.bf16.mxu0 %v422_v29  ;;  %v156_v19 = vld [vmem:[#allocation2 + $0x368] sm:$0xff]  ;;  %v141_v22 = vld [vmem:[#allocation2 + $0x2f0] sm:$0xff]  ;;  %v146_v23 = vld [vmem:[#allocation2 + $0x318] sm:$0xff]  ;;  %v440_v25 = vpack.c.bf16 %v147_v16, %v143_v15 }
  0x35   :  { %485 = vmatpush1.bf16.msra.mxu1 %v484_v45  ;;  %v150_v24 = vld [vmem:[#allocation2 + $0x338] sm:$0xff]  ;;  %v442_v26 = vpack.c.bf16 %v156_v19, %v152_v17  ;;  %v151_v27 = vld [vmem:[#allocation2 + $0x340] sm:$0xff]  ;;  %v160_v29 = vld [vmem:[#allocation2 + $0x388] sm:$0xff]  ;;  %v500_v30 = vpack.c.bf16 %v141_v22, %v137_v21 }
  0x36   :  { %487 = vmatprep.subr.bf16.mxu1 %v486_v47  ;;  %v155_v28 = vld [vmem:[#allocation2 + $0x360] sm:$0xff]  ;;  %v164_v31 = vld [vmem:[#allocation2 + $0x3a8] sm:$0xff]  ;;  %v502_v32 = vpack.c.bf16 %v150_v24, %v146_v23  ;;  %v145_v33 = vld [vmem:[#allocation2 + $0x310] sm:$0xff] }
  0x37   :  { %425 = vmatpush1.bf16.msra.mxu0 %v424_v40  ;;  %v149_v34 = vld [vmem:[#allocation2 + $0x330] sm:$0xff]  ;;  %v154_v35 = vld [vmem:[#allocation2 + $0x358] sm:$0xff]  ;;  %v444_v37 = vpack.c.bf16 %v155_v28, %v151_v27  ;;  %v446_v38 = vpack.c.bf16 %v164_v31, %v160_v29  ;;  %v159_v39 = vld [vmem:[#allocation2 + $0x380] sm:$0xff] }
  0x38   :  { %427 = vmatprep.subr.bf16.mxu0 %v426_v41  ;;  %v158_v36 = vld [vmem:[#allocation2 + $0x378] sm:$0xff]  ;;  %v163_v40 = vld [vmem:[#allocation2 + $0x3a0] sm:$0xff]  ;;  %v168_v41 = vld [vmem:[#allocation2 + $0x3c8] sm:$0xff]  ;;  %v504_v42 = vpack.c.bf16 %v149_v34, %v145_v33 }
  0x39   :  { %489 = vmatpush1.bf16.msra.mxu1 %v488_v58  ;;  %v172_v43 = vld [vmem:[#allocation2 + $0x3e8] sm:$0xff]  ;;  %v506_v44 = vpack.c.bf16 %v158_v36, %v154_v35  ;;  %v153_v45 = vld [vmem:[#allocation2 + $0x350] sm:$0xff]  ;;  %v162_v47 = vld [vmem:[#allocation2 + $0x398] sm:$0xff]  ;;  %v448_v49 = vpack.c.bf16 %v163_v40, %v159_v39 }
  0x3a   :  { %491 = vmatprep.subr.bf16.mxu1 %v490_v59  ;;  %v157_v46 = vld [vmem:[#allocation2 + $0x370] sm:$0xff]  ;;  %v166_v48 = vld [vmem:[#allocation2 + $0x3b8] sm:$0xff]  ;;  %v450_v50 = vpack.c.bf16 %v172_v43, %v168_v41  ;;  %v167_v51 = vld [vmem:[#allocation2 + $0x3c0] sm:$0xff] }
  0x3b   :  { %429 = vmatpush1.bf16.msra.mxu0 %v428_v52  ;;  %v171_v52 = vld [vmem:[#allocation2 + $0x3e0] sm:$0xff]  ;;  %v508_v53 = vpack.c.bf16 %v157_v46, %v153_v45  ;;  %v161_v55 = vld [vmem:[#allocation2 + $0x390] sm:$0xff]  ;;  %v170_v57 = vld [vmem:[#allocation2 + $0x3d8] sm:$0xff] }
  0x3c   :  { %431 = vmatprep.subr.bf16.mxu0 %v430_v54  ;;  %v510_v54 = vpack.c.bf16 %v166_v48, %v162_v47  ;;  %v165_v56 = vld [vmem:[#allocation2 + $0x3b0] sm:$0xff]  ;;  %v174_v58 = vld [vmem:[#allocation2 + $0x3f8] sm:$0xff]  ;;  %v452_v59 = vpack.c.bf16 %v171_v52, %v167_v51  ;;  %v46_v0 = vld [vmem:[%s637_s0] sm:$0xff] }
  0x3d   :  { %493 = vmatpush1.bf16.msra.mxu1 %v492_v6  ;;  %v512_v60 = vpack.c.bf16 %v165_v56, %v161_v55  ;;  %v514_v61 = vpack.c.bf16 %v174_v58, %v170_v57  ;;  %v169_v62 = vld [vmem:[#allocation2 + $0x3d0] sm:$0xff]  ;;  %v175_v5 = vld [vmem:[%s641_s4] sm:$0xf] }
  0x3e   :  { %495 = vmatprep.subr.bf16.mxu1 %v494_v8  ;;  %v173_v63 = vld [vmem:[#allocation2 + $0x3f0] sm:$0xff] }
  0x3f   :  { %433 = vmatpush1.bf16.msra.mxu0 %v432_v1  ;;  %v516_v1 = vpack.c.bf16 %v173_v63, %v169_v62 }
  0x40   :  { %435 = vmatprep.subr.bf16.mxu0 %v434_v2  ;;  %v177_v2 = vlaneseq }
  0x41   :  { %497 = vmatpush1.bf16.msra.mxu1 %v496_v18 }
  0x42   :  { %499 = vmatprep.subr.bf16.mxu1 %v498_v20  ;;  %v178_v3 = vshrl.u32 %v177_v2, 7 }
  0x43   :  { %437 = vmatpush1.bf16.msra.mxu0 %v436_v13 }
  0x44   :  { %439 = vmatprep.subr.bf16.mxu0 %v438_v14  ;;  %v179_v4 = vsub.s32 0, %v178_v3  ;;  %v183_v6 = vsub.s32 1, %v178_v3  ;;  %v191_v9 = vsub.s32 3, %v178_v3  ;;  %v187_v17 = vsub.s32 2, %v178_v3 }
  0x45   :  { %501 = vmatpush1.bf16.msra.mxu1 %v500_v30  ;;  %v42_v30 = vld [vmem:[%s639_s2] sm:$0xff] }
  0x46   :  { %503 = vmatprep.subr.bf16.mxu1 %v502_v32  ;;  %v180_v7 = vrot.slane %v175_v5, %v179_v4  ;;  %v184_v8 = vrot.slane %v175_v5, %v183_v6  ;;  %v192_v15 = vrot.slane %v175_v5, %v191_v9  ;;  %v188_v21 = vrot.slane %v175_v5, %v187_v17 }
  0x47   :  { %441 = vmatpush1.bf16.msra.mxu0 %v440_v25 }
  0x48   :  { %443 = vmatprep.subr.bf16.mxu0 %v442_v26 }
  0x49   :  { %505 = vmatpush1.bf16.msra.mxu1 %v504_v42 }
  0x4a   :  { %507 = vmatprep.subr.bf16.mxu1 %v506_v44 }
  0x4b   :  { %445 = vmatpush1.bf16.msra.mxu0 %v444_v37 }
  0x4c   :  { %447 = vmatprep.subr.bf16.mxu0 %v446_v38 }
  0x4d   :  { %509 = vmatpush1.bf16.msra.mxu1 %v508_v53 }
  0x4e   :  { %511 = vmatprep.subr.bf16.mxu1 %v510_v54 }
  0x4f   :  { %449 = vmatpush1.bf16.msra.mxu0 %v448_v49 }
  0x50   :  { %451 = vmatprep.subr.bf16.mxu0 %v450_v50 }
  0x51   :  { %513 = vmatpush1.bf16.msra.mxu1 %v512_v60 }
  0x52   :  { %515 = vmatprep.subr.bf16.mxu1 %v514_v61 }
  0x53   :  { %453 = vmatpush1.bf16.msra.mxu0 %v452_v59 }
  0x55   :  { %517 = vmatpush1.bf16.msra.mxu1 %v516_v1 }
  0x56   :  { %262 = vmatmul.mubr.f32.vlgmr.msra.gmra.mrb[0].mxu0 %v46_v0 }
  0x58   :  { %333 = vmatmul.mubr.f32.vlgmr.msra.gmra.mrb[0].mxu1 %v46_v0 }
 0x129   :  { %v263_v10 = vpop.f32.mrb[0].mxu0 }
 0x12a   :  { %v264_v11 = vadd.f32 %v263_v10, %v180_v7  ;;  %v265_v12 = vpop.f32.mrb[1].mxu0 }
 0x12b   :  { %v266_v13 = vadd.f32 %v265_v12, %v184_v8  ;;  %v334_v18 = vpop.f32.mrb[0].mxu1 }
 0x12c   :  { %v386_v14 = vmul.f32 -1.442695, %v264_v11  ;;  %v336_v19 = vpop.f32.mrb[1].mxu1  ;;  %v335_v23 = vadd.f32 %v334_v18, %v188_v21 }
 0x12d   :  { %v387_v16 = vmul.f32 -1.442695, %v266_v13  ;;  %v337_v20 = vadd.f32 %v336_v19, %v192_v15 }
 0x12e   :  { %521 = vpow2.f32 %v386_v14 }
 0x12f   :  { %523 = vpow2.f32 %v387_v16  ;;  %v388_v22 = vmul.f32 -1.442695, %v337_v20 }
 0x131   :  { %525 = vpow2.f32 %v388_v22 }
 0x132   :  { %527 = vtanh.f32 %v335_v23 }
 0x138   :  { %v522_v24 = vpop.eup %521 }
 0x139   :  { %v524_v25 = vpop.eup %523  ;;  %v342_v26 = vadd.f32 1.0, %v522_v24 }
 0x13a   :  { %v348_v27 = vadd.f32 1.0, %v524_v25 }
 0x13b   :  { %529 = vrcp.f32 %v342_v26  ;;  %v526_v28 = vpop.eup %525 }
 0x13c   :  { %531 = vrcp.f32 %v348_v27  ;;  %v528_v29 = vpop.eup %527  ;;  %v355_v32 = vadd.f32 1.0, %v526_v28 }
 0x13e   :  { %533 = vrcp.f32 %v355_v32 }
 0x145   :  { %v530_v31 = vpop.eup %529 }
 0x146   :  { %v532_v33 = vpop.eup %531  ;;  %v359_v34 = vmul.f32 %v530_v31, %v528_v29 }
 0x147   :  { %v358_v35 = vmul.f32 %v532_v33, %v42_v30 }
 0x148   :  { %v534_v37 = vpop.eup %533 }
 0x149   :  { %v360_v36 = vadd.f32 %v359_v34, %v358_v35 }
 0x14b   :  { %535 = vtanh.f32 %v360_v36 }
 0x155   :  { %v536_v38 = vpop.eup %535 }
 0x156   :  { %v362_v39 = vmul.f32 %v536_v38, %v534_v37 }
 0x158   :  { %v389_v40 = vmul.f32 -1.442695, %v362_v39 }
 0x15a   :  { %537 = vpow2.f32 %v389_v40 }
 0x15b   :  { %539 = vtanh.f32 %v362_v39 }
 0x164   :  { %v538_v41 = vpop.eup %537 }
 0x165   :  { %v366_v42 = vadd.f32 1.0, %v538_v41  ;;  %v540_v43 = vpop.eup %539 }
 0x167   :  { %541 = vrcp.f32 %v366_v42 }
 0x171   :  { %v542_v44 = vpop.eup %541 }
 0x172   :  { %v369_v45 = vmul.f32 %v542_v44, %v360_v36  ;;  %v371_v46 = vmul.f32 %v542_v44, %v540_v43 }
 0x174   :  { %v372_v47 = vadd.f32 %v371_v46, %v369_v45 }
 0x176   :  { %543 = vtanh.f32 %v372_v47  ;;  %376 = vst [vmem:[%s643_s6] sm:$0xff] %v372_v47 }
 0x180   :  { %v544_v48 = vpop.eup %543 }
 0x181   :  { %v374_v49 = vmul.f32 %v544_v48, %v542_v44 }
 0x183   :  { %375 = vst [vmem:[%s642_s5] sm:$0xff] %v374_v49 }
 0x184   :  { %385 = vsyncpa [#allocation3], 1 }

</bundles_post_ra>
